<compile_context>
chip_gen: v7x
topology: tpu7x:2x2x1
jax: 0.10.0
libtpu: 0.0.40
codegen_flags: <defaults>
</compile_context>

<pallas_src>
import jax
import jax.numpy as jnp
from jax.experimental import pallas as pl
from jax.experimental.pallas import tpu as pltpu


def _round_up(n, m):
    return ((n + m - 1) // m) * m


def dqn_kernel(x_ref, w1_ref, b1_ref, w2_ref, b2_ref, w3_ref, b3_ref, o_ref):
    # fc1 + ReLU  (bf16 MXU operands, f32 accumulation, f32 epilogue)
    h1 = jnp.dot(x_ref[...], w1_ref[...], preferred_element_type=jnp.float32)
    h1 = jnp.maximum(h1 + b1_ref[...], 0.0).astype(jnp.bfloat16)
    # fc2 + ReLU
    h2 = jnp.dot(h1, w2_ref[...], preferred_element_type=jnp.float32)
    h2 = jnp.maximum(h2 + b2_ref[...], 0.0).astype(jnp.bfloat16)
    # fc3 (raw Q-values; output is lane-dense padded to a multiple of 128)
    q = jnp.dot(h2, w3_ref[...], preferred_element_type=jnp.float32)
    o_ref[...] = (q + b3_ref[...]).astype(o_ref.dtype)


def dqn_forward(x, params, *, max_batch_tile=256):
    """x: (B, input_dims) f32; params: dict of pre-transposed weights/biases."""
    w1, b1, w2, b2, w3, b3 = (
        params["w1"], params["b1"], params["w2"],
        params["b2"], params["w3"], params["b3"],
    )
    B, d_in = x.shape
    f1 = w1.shape[1]
    f2 = w2.shape[1]
    n_act = w3.shape[1]

    # Batch tile: multiple of 16 rows (bf16 packs 2 rows / sublane), <= 256.
    tb = min(max_batch_tile, _round_up(B, 16))
    b_pad = _round_up(B, tb)
    # Lane-dense output width (multiple of 128).
    a_pad = _round_up(n_act, 128)

    # XLA-side padding / casting (outside the kernel).
    x_p = x if b_pad == B else jnp.pad(x, ((0, b_pad - B), (0, 0)))
    x_bf = x_p.astype(jnp.bfloat16)
    w1_bf = w1.astype(jnp.bfloat16)
    w2_bf = w2.astype(jnp.bfloat16)
    w3_p = jnp.pad(w3, ((0, 0), (0, a_pad - n_act))).astype(jnp.bfloat16)
    b3_p = jnp.pad(b3, ((0, 0), (0, a_pad - n_act)))

    grid = (b_pad // tb,)

    flops = 2 * b_pad * (d_in * f1 + f1 * f2 + f2 * a_pad)
    bytes_accessed = (
        x_bf.size * 2 + w1_bf.size * 2 + w2_bf.size * 2 + w3_p.size * 2
        + b1.size * 4 + b2.size * 4 + b3_p.size * 4
        + b_pad * a_pad * 4
    )

    out_padded = pl.pallas_call(
        dqn_kernel,
        out_shape=jax.ShapeDtypeStruct((b_pad, a_pad), jnp.float32),
        grid_spec=pltpu.PrefetchScalarGridSpec(
            num_scalar_prefetch=0,
            grid=grid,
            in_specs=[
                pl.BlockSpec((tb, d_in), lambda i: (i, 0)),    # x tile (pipelined)
                pl.BlockSpec((d_in, f1), lambda i: (0, 0)),    # w1 (resident)
                pl.BlockSpec((1, f1), lambda i: (0, 0)),       # b1 (resident)
                pl.BlockSpec((f1, f2), lambda i: (0, 0)),      # w2 (resident)
                pl.BlockSpec((1, f2), lambda i: (0, 0)),       # b2 (resident)
                pl.BlockSpec((f2, a_pad), lambda i: (0, 0)),   # w3 padded (resident)
                pl.BlockSpec((1, a_pad), lambda i: (0, 0)),    # b3 padded (resident)
            ],
            out_specs=pl.BlockSpec((tb, a_pad), lambda i: (i, 0)),
        ),
        compiler_params=pltpu.CompilerParams(
            dimension_semantics=("parallel",),
            vmem_limit_bytes=32 * 1024 * 1024,  # safe for v7x's 64 MiB VMEM
        ),
        cost_estimate=pl.CostEstimate(
            flops=flops, transcendentals=0, bytes_accessed=bytes_accessed),
    )(x_bf, w1_bf, b1, w2_bf, b2, w3_p, b3_p)

    # Strip batch / action padding outside the kernel (pure XLA slice).
    return out_padded[:B, :n_act]


def init_params(key, input_dims, fc1_dims, fc2_dims, n_actions):
    """Deterministic init mimicking torch.nn.Linear default:
    U(-1/sqrt(fan_in), 1/sqrt(fan_in)) for both weight and bias."""
    def linear(k, fan_in, fan_out):
        kw, kb = jax.random.split(k)
        bound = 1.0 / jnp.sqrt(jnp.float32(fan_in))
        w = jax.random.uniform(kw, (fan_in, fan_out), jnp.float32, -bound, bound)
        b = jax.random.uniform(kb, (1, fan_out), jnp.float32, -bound, bound)
        return w, b

    k1, k2, k3 = jax.random.split(key, 3)
    w1, b1 = linear(k1, input_dims, fc1_dims)
    w2, b2 = linear(k2, fc1_dims, fc2_dims)
    w3, b3 = linear(k3, fc2_dims, n_actions)
    return {"w1": w1, "b1": b1, "w2": w2, "b2": b2, "w3": w3, "b3": b3}


def dqn_forward_ref_f32(x, p):
    h1 = jnp.maximum(x @ p["w1"] + p["b1"], 0.0)
    h2 = jnp.maximum(h1 @ p["w2"] + p["b2"], 0.0)
    return h2 @ p["w3"] + p["b3"]


def dqn_forward_ref_bf16(x, p):
    # Mirrors the kernel's bf16-operand / f32-accumulate numerics.
    h1 = jnp.dot(x.astype(jnp.bfloat16), p["w1"].astype(jnp.bfloat16),
                 preferred_element_type=jnp.float32)
    h1 = jnp.maximum(h1 + p["b1"], 0.0).astype(jnp.bfloat16)
    h2 = jnp.dot(h1, p["w2"].astype(jnp.bfloat16),
                 preferred_element_type=jnp.float32)
    h2 = jnp.maximum(h2 + p["b2"], 0.0).astype(jnp.bfloat16)
    q = jnp.dot(h2, p["w3"].astype(jnp.bfloat16),
                preferred_element_type=jnp.float32)
    return q + p["b3"]


if __name__ == "__main__":
    # Small shapes consistent with a DQN MLP agent (state dim 8, 4 actions).
    batch, input_dims, fc1_dims, fc2_dims, n_actions = 8, 8, 128, 128, 4

    key = jax.random.PRNGKey(0)
    k_params, k_x = jax.random.split(key)
    params = init_params(k_params, input_dims, fc1_dims, fc2_dims, n_actions)
    x = jax.random.normal(k_x, (batch, input_dims), jnp.float32)

    out = dqn_forward(x, params)
    out = jax.block_until_ready(out)
    assert out.shape == (batch, n_actions)

    # Tight check against a reference that uses the same bf16-operand path.
    ref_bf16 = dqn_forward_ref_bf16(x, params)
    assert jnp.allclose(out, ref_bf16, atol=2e-3, rtol=2e-3), \
        "mismatch vs bf16-path reference"

    # Loose check against the exact f32 torch-equivalent forward
    # (bf16 MXU operands introduce ~0.5% relative error).
    ref_f32 = dqn_forward_ref_f32(x, params)
    assert jnp.allclose(out, ref_f32, atol=5e-2, rtol=5e-2), \
        "mismatch vs f32 reference"

    print("KERNEL_OK")
</pallas_src>

<mosaic_0001>
module attributes {stable_mosaic.version = 11 : i64} {
  func.func @dqn_kernel(%arg0: i32, %arg1: memref<16x8xbf16, #tpu.memory_space<vmem>>, %arg2: memref<8x128xbf16, #tpu.memory_space<vmem>>, %arg3: memref<1x128xf32, #tpu.memory_space<vmem>>, %arg4: memref<128x128xbf16, #tpu.memory_space<vmem>>, %arg5: memref<1x128xf32, #tpu.memory_space<vmem>>, %arg6: memref<128x128xbf16, #tpu.memory_space<vmem>>, %arg7: memref<1x128xf32, #tpu.memory_space<vmem>>, %arg8: memref<16x128xf32, #tpu.memory_space<vmem>>) attributes {dimension_semantics = [#tpu.dimension_semantics<parallel>], iteration_bounds = array<i64: 1>, scalar_prefetch = 0 : i64, scratch_operands = 0 : i64, tpu.core_type = #tpu.core_type<tc>, window_params = [{transform_indices = @transform_0, window_bounds = array<i64: 16, 8>}, {pipeline_mode = #tpu.pipeline_mode<synchronous>, transform_indices = @transform_1, window_bounds = array<i64: 8, 128>}, {pipeline_mode = #tpu.pipeline_mode<synchronous>, transform_indices = @transform_2, window_bounds = array<i64: 1, 128>}, {pipeline_mode = #tpu.pipeline_mode<synchronous>, transform_indices = @transform_3, window_bounds = array<i64: 128, 128>}, {pipeline_mode = #tpu.pipeline_mode<synchronous>, transform_indices = @transform_4, window_bounds = array<i64: 1, 128>}, {pipeline_mode = #tpu.pipeline_mode<synchronous>, transform_indices = @transform_5, window_bounds = array<i64: 128, 128>}, {pipeline_mode = #tpu.pipeline_mode<synchronous>, transform_indices = @transform_6, window_bounds = array<i64: 1, 128>}, {transform_indices = @transform_7, window_bounds = array<i64: 16, 128>}]} {
    %c0 = arith.constant 0 : index
    %c0_0 = arith.constant 0 : index
    %0 = vector.load %arg1[%c0, %c0_0] : memref<16x8xbf16, #tpu.memory_space<vmem>>, vector<16x8xbf16>
    %c0_1 = arith.constant 0 : index
    %c0_2 = arith.constant 0 : index
    %1 = vector.load %arg2[%c0_1, %c0_2] : memref<8x128xbf16, #tpu.memory_space<vmem>>, vector<8x128xbf16>
    %cst = arith.constant dense<0.000000e+00> : vector<16x128xf32>
    %2 = tpu.matmul %0, %1, %cst {dimension_numbers = #tpu.dot_dimension_numbers<[1], [0], [0], [1], [0, 0, 1, 1], [], []>} : vector<16x8xbf16>, vector<8x128xbf16>, vector<16x128xf32> -> vector<16x128xf32>
    %c0_3 = arith.constant 0 : index
    %c0_4 = arith.constant 0 : index
    %3 = vector.load %arg3[%c0_3, %c0_4] : memref<1x128xf32, #tpu.memory_space<vmem>>, vector<1x128xf32>
    %4 = vector.broadcast %3 : vector<1x128xf32> to vector<16x128xf32>
    %5 = arith.addf %2, %4 : vector<16x128xf32>
    %cst_5 = arith.constant 0.000000e+00 : f32
    %6 = vector.broadcast %cst_5 : f32 to vector<16x128xf32>
    %7 = arith.maximumf %5, %6 : vector<16x128xf32>
    %8 = arith.truncf %7 : vector<16x128xf32> to vector<16x128xbf16>
    %c0_6 = arith.constant 0 : index
    %c0_7 = arith.constant 0 : index
    %9 = vector.load %arg4[%c0_6, %c0_7] : memref<128x128xbf16, #tpu.memory_space<vmem>>, vector<128x128xbf16>
    %cst_8 = arith.constant dense<0.000000e+00> : vector<16x128xf32>
    %10 = tpu.matmul %8, %9, %cst_8 {dimension_numbers = #tpu.dot_dimension_numbers<[1], [0], [0], [1], [0, 0, 1, 1], [], []>} : vector<16x128xbf16>, vector<128x128xbf16>, vector<16x128xf32> -> vector<16x128xf32>
    %c0_9 = arith.constant 0 : index
    %c0_10 = arith.constant 0 : index
    %11 = vector.load %arg5[%c0_9, %c0_10] : memref<1x128xf32, #tpu.memory_space<vmem>>, vector<1x128xf32>
    %12 = vector.broadcast %11 : vector<1x128xf32> to vector<16x128xf32>
    %13 = arith.addf %10, %12 : vector<16x128xf32>
    %cst_11 = arith.constant 0.000000e+00 : f32
    %14 = vector.broadcast %cst_11 : f32 to vector<16x128xf32>
    %15 = arith.maximumf %13, %14 : vector<16x128xf32>
    %16 = arith.truncf %15 : vector<16x128xf32> to vector<16x128xbf16>
    %c0_12 = arith.constant 0 : index
    %c0_13 = arith.constant 0 : index
    %17 = vector.load %arg6[%c0_12, %c0_13] : memref<128x128xbf16, #tpu.memory_space<vmem>>, vector<128x128xbf16>
    %cst_14 = arith.constant dense<0.000000e+00> : vector<16x128xf32>
    %18 = tpu.matmul %16, %17, %cst_14 {dimension_numbers = #tpu.dot_dimension_numbers<[1], [0], [0], [1], [0, 0, 1, 1], [], []>} : vector<16x128xbf16>, vector<128x128xbf16>, vector<16x128xf32> -> vector<16x128xf32>
    %c0_15 = arith.constant 0 : index
    %c0_16 = arith.constant 0 : index
    %19 = vector.load %arg7[%c0_15, %c0_16] : memref<1x128xf32, #tpu.memory_space<vmem>>, vector<1x128xf32>
    %20 = vector.broadcast %19 : vector<1x128xf32> to vector<16x128xf32>
    %21 = arith.addf %18, %20 : vector<16x128xf32>
    %c0_17 = arith.constant 0 : index
    %c0_18 = arith.constant 0 : index
    %22 = vector.load %arg8[%c0_17, %c0_18] : memref<16x128xf32, #tpu.memory_space<vmem>>, vector<16x128xf32>
    tpu.vector_store %arg8[%c0_17, %c0_18], %21 {strides = array<i32>} : memref<16x128xf32, #tpu.memory_space<vmem>>, vector<16x128xf32>,
    return
  }
  func.func @transform_0(%arg0: i32) -> (i32, i32) {
    %c0_i32 = arith.constant 0 : i32
    %c0_i32_0 = arith.constant 0 : i32
    return %arg0, %c0_i32 : i32, i32
  }
  func.func @transform_1(%arg0: i32) -> (i32, i32) {
    %c0_i32 = arith.constant 0 : i32
    %c0_i32_0 = arith.constant 0 : i32
    %c0_i32_1 = arith.constant 0 : i32
    return %c0_i32, %c0_i32_0 : i32, i32
  }
  func.func @transform_2(%arg0: i32) -> (i32, i32) {
    %c0_i32 = arith.constant 0 : i32
    %c0_i32_0 = arith.constant 0 : i32
    %c0_i32_1 = arith.constant 0 : i32
    return %c0_i32, %c0_i32_0 : i32, i32
  }
  func.func @transform_3(%arg0: i32) -> (i32, i32) {
    %c0_i32 = arith.constant 0 : i32
    %c0_i32_0 = arith.constant 0 : i32
    %c0_i32_1 = arith.constant 0 : i32
    return %c0_i32, %c0_i32_0 : i32, i32
  }
  func.func @transform_4(%arg0: i32) -> (i32, i32) {
    %c0_i32 = arith.constant 0 : i32
    %c0_i32_0 = arith.constant 0 : i32
    %c0_i32_1 = arith.constant 0 : i32
    return %c0_i32, %c0_i32_0 : i32, i32
  }
  func.func @transform_5(%arg0: i32) -> (i32, i32) {
    %c0_i32 = arith.constant 0 : i32
    %c0_i32_0 = arith.constant 0 : i32
    %c0_i32_1 = arith.constant 0 : i32
    return %c0_i32, %c0_i32_0 : i32, i32
  }
  func.func @transform_6(%arg0: i32) -> (i32, i32) {
    %c0_i32 = arith.constant 0 : i32
    %c0_i32_0 = arith.constant 0 : i32
    %c0_i32_1 = arith.constant 0 : i32
    return %c0_i32, %c0_i32_0 : i32, i32
  }
  func.func @transform_7(%arg0: i32) -> (i32, i32) {
    %c0_i32 = arith.constant 0 : i32
    %c0_i32_0 = arith.constant 0 : i32
    return %arg0, %c0_i32 : i32, i32
  }
}

</mosaic_0001>

<bundles_post_ra>
// kernel: tpu_custom_call.1
= control target key start
LH: loop header
LB: loop body
LE: loop exit
PB: predicated region body
PF: predicated region fallthrough
CT: control target
= control target key end

     0   :  { %12 = vsyncpa [#allocation3], 0  ;;  %s678_s0 = inlined_call_operand.vmem [shape: bf16[16,8], index: 0, kind: input, shape index: {}]   ;;  %s679_s1 = inlined_call_operand.vmem [shape: bf16[8,128], index: 1, kind: input, shape index: {}]   ;;  %s680_s2 = inlined_call_operand.vmem [shape: f32[1,128], index: 2, kind: input, shape index: {}]   ;;  %s681_s3 = inlined_call_operand.hbm [shape: bf16[128,128], index: 3, kind: input, shape index: {}]   ;;  %s682_s4 = inlined_call_operand.vmem [shape: f32[1,128], index: 4, kind: input, shape index: {}]   ;;  %s683_s5 = inlined_call_operand.hbm [shape: bf16[128,128], index: 5, kind: input, shape index: {}]   ;;  %s684_s6 = inlined_call_operand.vmem [shape: f32[1,128], index: 6, kind: input, shape index: {}]   ;;  %s685_s7 = inlined_call_operand.hbm [shape: f32[16,128], index: 7, kind: output, shape index: {}]  }
   0x1   :  { %13 = vsyncpa [#allocation6], 0 }
   0x2   :  { %14 = vsyncpa [#allocation4], 0  ;;  %s555_s24 = smov [#allocation2]   ;;  %s483_s28 = scalar_lea.hbm %s681_s3, 1024 }
   0x3   :  { %s26_s25 = sshll.u32 %s555_s24, 4  ;;  %p484_p0 = scmp.ne.s32.totalorder %s681_s3, %s483_s28  ;;  %s27_s25 = int_to_ptr.vmem [resolvable:$true] %s26_s25 }
   0x4   :  { %p487_p1 = scmp.lt.u32.totalorder %s483_s28, %s681_s3 }
   0x6   :  { %p489_p2 = pnand %p487_p1, %p484_p0 }
   0x8   :  { %492 = shalt.err (!%p489_p2)
}
   0x9   :  { %s493_s10 = scalar_lea.vmem %s27_s25, 1024  ;;  %p498_p4 = scmp.lt.s32.totalorder %s27_s25, %s27_s25 }
   0xa   :  { %p494_p3 = scmp.ne.s32.totalorder %s27_s25, %s493_s10  ;;  %p499_p5 = scmp.lt.s32.totalorder %s493_s10, %s493_s10 }
   0xc   :  { %p500_p6 = por %p499_p5, %p498_p4 }
   0xe   :  { %p501_p7 = pnand %p500_p6, %p494_p3 }
  0x10   :  { %504 = shalt.err (!%p501_p7)
}
  0x11   :  { %s556_s11 = smov 64   ;;  %s557_s12 = smov 4  }
  0x12   :  { %32 = dma.hbm_to_vmem [thread:$0]  %s681_s3, 1024, %s27_s25, [#allocation3], %s556_s11, %s556_s11, %s557_s12  }
  0x13   :  { %s558_s15 = smov [#allocation5]   ;;  %s505_s19 = scalar_lea.hbm %s683_s5, 1024 }
  0x14   :  { %s40_s16 = sshll.u32 %s558_s15, 4  ;;  %p506_p8 = scmp.ne.s32.totalorder %s683_s5, %s505_s19  ;;  %s41_s16 = int_to_ptr.vmem [resolvable:$true] %s40_s16 }
  0x15   :  { %p509_p9 = scmp.lt.u32.totalorder %s505_s19, %s683_s5 }
  0x17   :  { %p511_p10 = pnand %p509_p9, %p506_p8 }
  0x19   :  { %514 = shalt.err (!%p511_p10)
}
  0x1a   :  { %s515_s24 = scalar_lea.vmem %s41_s16, 1024  ;;  %p520_p12 = scmp.lt.s32.totalorder %s41_s16, %s41_s16 }
  0x1b   :  { %p516_p11 = scmp.ne.s32.totalorder %s41_s16, %s515_s24  ;;  %p521_p13 = scmp.lt.s32.totalorder %s515_s24, %s515_s24 }
  0x1d   :  { %p522_p0 = por %p521_p13, %p520_p12 }
  0x1f   :  { %p523_p1 = pnand %p522_p0, %p516_p11 }
  0x21   :  { %526 = shalt.err (!%p523_p1)
}
  0x22   :  { %46 = dma.hbm_to_vmem [thread:$0]  %s683_s5, 1024, %s41_s16, [#allocation6], %s556_s11, %s556_s11, %s557_s12  }
  0x23   :  { %549 = dma.done.wait [#allocation3], 1024  }
  0x24   :  { %550 = vsyncadd [#allocation3], 4294966272 }
  0x25   :  { %551 = dma.done.wait [#allocation6], 1024  }
  0x26   :  { %552 = vsyncadd [#allocation6], 4294966272  ;;  %v559_v0 = vmov 0.0   ;;  %vm560_vm0 = vmmov 0   ;;  %vm75_vm1 = vcmask 1043456   ;;  %v466_v3 = vld [vmem:[%s678_s0] sm:$0xff]  }
  0x27   :  { %411 = vmatprep.subr.bf16.mxu0 %v559_v0  ;;  %413 = vmatprep.mubr.msk.bf16.mxu0 %vm560_vm0, %v559_v0  ;;  %v58_v1 = vld [vmem:[%s679_s1] sm:$0xf]  ;;  %vm71_vm2 = vcmask 64512   ;;  %v468_v5 = vld [vmem:[#allocation2 + $0x8] sm:$0xff]   ;;  %v469_v6 = vld [vmem:[#allocation2 + $0x10] sm:$0xff]   ;;  %s561_s9 = smov [#allocation7]  }
  0x28   :  { %417 = vmatprep.subr.bf16.mxu1 %v559_v0  ;;  %433 = vmatprep.mubr.msk.bf16.mxu1 %vm560_vm0, %v559_v0  ;;  %v77_v2 = vsel %vm75_vm1, %v58_v1, 0  ;;  %v467_v4 = vld [vmem:[#allocation2] sm:$0xff]   ;;  %v470_v7 = vld [vmem:[#allocation2 + $0x18] sm:$0xff]   ;;  %v472_v9 = vld [vmem:[#allocation2 + $0x28] sm:$0xff]   ;;  %s357_s10 = sshll.u32 %s561_s9, 4  ;;  %s358_s10 = int_to_ptr.vmem [resolvable:$true] %s357_s10 }
  0x29   :  { %412 = vmatpush3.bf16.msra.mxu0 %v77_v2  ;;  %418 = vmatpush3.bf16.msra.mxu1 %v467_v4  ;;  %v471_v8 = vld [vmem:[#allocation2 + $0x20] sm:$0xff]   ;;  %v473_v10 = vld [vmem:[#allocation2 + $0x30] sm:$0xff]   ;;  %v474_v11 = vld [vmem:[#allocation2 + $0x38] sm:$0xff]   ;;  %p532_p3 = scmp.lt.s32.totalorder %s358_s10, %s358_s10 }
  0x2a   :  { %437 = vmatprep.subr.bf16.mxu0 %v559_v0  ;;  %419 = vmatprep.subr.bf16.mxu1 %v559_v0  ;;  %v475_v12 = vld [vmem:[#allocation5] sm:$0xff]   ;;  %v476_v13 = vld [vmem:[#allocation5 + $0x8] sm:$0xff]   ;;  %v477_v14 = vld [vmem:[#allocation5 + $0x10] sm:$0xff]  }
  0x2b   :  { %v478_v15 = vld [vmem:[#allocation5 + $0x18] sm:$0xff]   ;;  %v479_v16 = vld [vmem:[#allocation5 + $0x20] sm:$0xff]   ;;  %v480_v17 = vld [vmem:[#allocation5 + $0x28] sm:$0xff]  }
  0x2c   :  { %414 = vmatmul.mubr.msk.bf16.vlgmr.msra.gmra.mrb[0].mxu0 %vm71_vm2, %v466_v3  ;;  %v370_v18 = vld [vmem:[%s680_s2] ss:$0 sm:$0xff]  ;;  %v481_v28 = vld [vmem:[#allocation5 + $0x30] sm:$0xff]   ;;  %v482_v29 = vld [vmem:[#allocation5 + $0x38] sm:$0xff]  }
  0x2d   :  { %453 = vmatprep.mubr.msk.bf16.mxu0 %vm560_vm0, %v559_v0  ;;  %420 = vmatpush3.bf16.msra.mxu1 %v468_v5  ;;  %v373_v30 = vld [vmem:[%s682_s4] ss:$0 sm:$0xff]  ;;  %s527_s4 = scalar_lea.vmem %s358_s10, 256 }
  0x2e   :  { %421 = vmatprep.subr.bf16.mxu1 %v559_v0  ;;  %438 = vmatpush3.bf16.msra.mxu0 %v475_v12  ;;  %v382_v40 = vld [vmem:[%s684_s6] ss:$0 sm:$0xff]  ;;  %p528_p2 = scmp.ne.s32.totalorder %s358_s10, %s527_s4  ;;  %p533_p4 = scmp.lt.s32.totalorder %s527_s4, %s527_s4 }
  0x2f   :  { %439 = vmatprep.subr.bf16.mxu0 %v559_v0 }
  0x30   :  { %p534_p5 = por %p533_p4, %p532_p3 }
  0x31   :  { %422 = vmatpush3.bf16.msra.mxu1 %v469_v6 }
  0x32   :  { %423 = vmatprep.subr.bf16.mxu1 %v559_v0  ;;  %440 = vmatpush3.bf16.msra.mxu0 %v476_v13  ;;  %p535_p6 = pnand %p534_p5, %p528_p2 }
  0x33   :  { %441 = vmatprep.subr.bf16.mxu0 %v559_v0 }
  0x35   :  { %424 = vmatpush3.bf16.msra.mxu1 %v470_v7 }
  0x36   :  { %425 = vmatprep.subr.bf16.mxu1 %v559_v0  ;;  %442 = vmatpush3.bf16.msra.mxu0 %v477_v14 }
  0x37   :  { %443 = vmatprep.subr.bf16.mxu0 %v559_v0 }
  0x39   :  { %426 = vmatpush3.bf16.msra.mxu1 %v471_v8 }
  0x3a   :  { %427 = vmatprep.subr.bf16.mxu1 %v559_v0  ;;  %444 = vmatpush3.bf16.msra.mxu0 %v478_v15 }
  0x3b   :  { %445 = vmatprep.subr.bf16.mxu0 %v559_v0 }
  0x3d   :  { %428 = vmatpush3.bf16.msra.mxu1 %v472_v9 }
  0x3e   :  { %429 = vmatprep.subr.bf16.mxu1 %v559_v0  ;;  %446 = vmatpush3.bf16.msra.mxu0 %v479_v16 }
  0x3f   :  { %447 = vmatprep.subr.bf16.mxu0 %v559_v0 }
  0x41   :  { %430 = vmatpush3.bf16.msra.mxu1 %v473_v10 }
  0x42   :  { %431 = vmatprep.subr.bf16.mxu1 %v559_v0  ;;  %448 = vmatpush3.bf16.msra.mxu0 %v480_v17 }
  0x43   :  { %449 = vmatprep.subr.bf16.mxu0 %v559_v0 }
  0x45   :  { %432 = vmatpush3.bf16.msra.mxu1 %v474_v11 }
  0x46   :  { %450 = vmatpush3.bf16.msra.mxu0 %v481_v28 }
  0x47   :  { %451 = vmatprep.subr.bf16.mxu0 %v559_v0 }
  0x4a   :  { %452 = vmatpush3.bf16.msra.mxu0 %v482_v29 }
  0xff   :  { %v113_v19 = vpop.f32.mrb[0].mxu0 }
 0x100   :  { %v114_v20 = vadd.f32 %v370_v18, %v113_v19  ;;  %v415_v21 = vpop.f32.mrb[1].mxu0 }
 0x101   :  { %v116_v22 = vpop.f32.mrb[2].mxu0 }
 0x102   :  { %v117_v23 = vadd.f32 %v370_v18, %v116_v22  ;;  %v416_v24 = vpop.f32.mrb[3].mxu0  ;;  %v120_v25 = vmax.f32 %v114_v20, 0.0 }
 0x104   :  { %v121_v26 = vmax.f32 %v117_v23, 0.0 }
 0x106   :  { %v122_v27 = vpack.c.bf16 %v121_v26, %v120_v25 }
 0x108   :  { %434 = vmatmul.mubr.bf16.vlgmr.msra.gmra.mrb[0].mxu1 %v122_v27 }
 0x1db   :  { %v228_v31 = vpop.f32.mrb[0].mxu1 }
 0x1dc   :  { %v229_v32 = vadd.f32 %v373_v30, %v228_v31  ;;  %v435_v33 = vpop.f32.mrb[1].mxu1 }
 0x1dd   :  { %v231_v34 = vpop.f32.mrb[2].mxu1 }
 0x1de   :  { %v232_v35 = vadd.f32 %v373_v30, %v231_v34  ;;  %v436_v36 = vpop.f32.mrb[3].mxu1  ;;  %v235_v37 = vmax.f32 %v229_v32, 0.0 }
 0x1e0   :  { %v236_v38 = vmax.f32 %v232_v35, 0.0 }
 0x1e2   :  { %v237_v39 = vpack.c.bf16 %v236_v38, %v235_v37 }
 0x1e4   :  { %454 = vmatmul.mubr.bf16.vlgmr.msra.gmra.mrb[4].mxu0 %v237_v39 }
 0x2b7   :  { %v343_v41 = vpop.f32.mrb[4].mxu0 }
 0x2b8   :  { %v344_v42 = vadd.f32 %v382_v40, %v343_v41  ;;  %v455_v43 = vpop.f32.mrb[5].mxu0 }
 0x2b9   :  { %v346_v44 = vpop.f32.mrb[6].mxu0 }
 0x2ba   :  { %350 = vst [vmem:[#allocation7] sm:$0xff] %v344_v42  ;;  %v347_v45 = vadd.f32 %v382_v40, %v346_v44  ;;  %v456_v46 = vpop.f32.mrb[7].mxu0 }
 0x2bc   :  { %351 = vst [vmem:[#allocation7 + $0x8] sm:$0xff] %v347_v45 }
 0x2bd   :  { %538 = shalt.err (!%p535_p6)
}
 0x2be   :  { %s539_s12 = scalar_lea.hbm %s685_s7, 256 }
 0x2bf   :  { %p540_p7 = scmp.ne.s32.totalorder %s685_s7, %s539_s12  ;;  %p543_p8 = scmp.lt.u32.totalorder %s539_s12, %s685_s7 }
 0x2c1   :  { %p545_p9 = pnand %p543_p8, %p540_p7 }
 0x2c3   :  { %548 = shalt.err (!%p545_p9)
}
 0x2c4   :  { %s562_s17 = smov 128   ;;  %s563_s18 = smov 8  }
 0x2c5   :  { %363 = dma.vmem_to_hbm [thread:$0]  %s358_s10, 256, %s685_s7, [#allocation4], %s562_s17, %s562_s17, %s563_s18  }
 0x2c6   :  { %553 = dma.done.wait [#allocation4], 256  }
 0x2c7   :  { %554 = vsyncadd [#allocation4], 4294967040 }
 0x2c8   :  { %367 = vsyncpa [#allocation3], 1 }
 0x2c9   :  { %368 = vsyncpa [#allocation6], 1 }
 0x2ca   :  { %369 = vsyncpa [#allocation4], 1 }

</bundles_post_ra>
